<compile_context>
chip_gen: v5e
topology: v5e:2x2
jax: 0.10.0
libtpu: 0.0.40
codegen_flags: <defaults>
</compile_context>

<pallas_src>
import functools

import jax
import jax.numpy as jnp
from jax import lax
from jax.experimental import pallas as pl
from jax.experimental.pallas import tpu as pltpu


def expand_mask_kernel(x_ref, o_ref, *, stride, padding, unroll):
    # x_ref : (Nb, C, H, W)  native input dtype (0/1 mask)
    # o_ref : (Nb, Hs, Ws)   int8 single-channel mask (0/1); bool+C-broadcast in wrapper
    nb, c, h, w = x_ref.shape
    _, hs, ws = o_ref.shape

    # Structural 0/1 matrices, built in-register from iotas (no HBM operands,
    # C-independent). Rebuilt once per grid step -- trivial VPU work hidden under
    # the input DMA (persistent-scratch init under pid==0 is not megacore-safe).
    # mh[i, p] = 1{|i - p*stride| <= padding}          -> (Hs, H)
    irow = lax.broadcasted_iota(jnp.int32, (hs, h), 0)      # output row index
    pcol = lax.broadcasted_iota(jnp.int32, (hs, h), 1)      # original row index
    mh = jnp.where(jnp.abs(irow - pcol * stride) <= padding, 1.0, 0.0).astype(
        jnp.bfloat16)
    # mwt[l, q] = M_W[q, l] = 1{|q - l*stride| <= padding}  -> (W, Ws)
    lrow = lax.broadcasted_iota(jnp.int32, (w, ws), 0)       # original column index
    qcol = lax.broadcasted_iota(jnp.int32, (w, ws), 1)       # output column index
    mwt = jnp.where(jnp.abs(qcol - lrow * stride) <= padding, 1.0, 0.0).astype(
        jnp.bfloat16)

    def body(b, carry):
        # Channel sum on the VPU (C-1 vector adds); no (C,H,W)->(C*H,W) relayout.
        xb = jnp.sum(x_ref[b].astype(jnp.float32), axis=0).astype(jnp.bfloat16)  # (H, W)
        # Separable transform on the MXU with f32 accumulation (exact for 0/1 masks).
        t = jnp.dot(mh, xb, preferred_element_type=jnp.float32)                  # (Hs, W)
        out2d = jnp.dot(t.astype(jnp.bfloat16), mwt,
                        preferred_element_type=jnp.float32)                      # (Hs, Ws)
        o_ref[b] = (out2d > 0.5).astype(jnp.int8)
        return carry

    lax.fori_loop(0, nb, body, 0, unroll=unroll)


def _vmem_limit_bytes():
    """Scoped-VMEM limit for this kernel: 75% of physical when queryable
    (v5e/v6e 128 MiB -> 96 MiB, v7x 64 MiB -> 48 MiB); 48 MiB fallback (safe on
    every generation)."""
    cap = None
    try:
        cap = getattr(pltpu.get_tpu_info(), "vmem_capacity_bytes", None)
    except Exception:
        cap = None
    if not cap:
        cap = 64 << 20
    return max(16 << 20, min(int(cap) * 3 // 4, 96 << 20))


def _pick_batch_block(n, per_image_bytes, budget_bytes):
    """Largest divisor of n whose block fits the VMEM budget, keeping grid >= 2
    when possible (near-free on 1-TC chips, keeps both v7x TensorCores busy)."""
    cap = max(1, budget_bytes // max(per_image_bytes, 1))
    min_grid = 2 if n >= 2 else 1
    best = 1
    for nb in range(1, n + 1):
        if n % nb == 0 and nb <= cap and n // nb >= min_grid:
            best = nb
    return best


def expand_mask(x, stride=2, padding=1, batch_block=None):
    """x: (N, C, H, W), any dtype (intended: 0/1 mask from the producer — no need
    to upcast upstream); returns bool (N, C, H*stride, W*stride)."""
    n, c, h, w = x.shape
    hs, ws = h * stride, w * stride

    vmem_limit = _vmem_limit_bytes()
    if batch_block is None:
        in_b = jnp.dtype(x.dtype).itemsize
        # double-buffered input block + double-buffered int8 single-channel output
        per_img = 2 * c * h * w * in_b + 2 * hs * ws
        # in-kernel temporaries (per-image f32 cast, matmul temps, M_H/M_W^T)
        fixed = (c * h * w * 4 + h * w * 4 + hs * w * 4 + hs * ws * 4
                 + hs * h * 2 + w * ws * 2)
        budget = max(vmem_limit // 2 - fixed, per_img)
        batch_block = _pick_batch_block(n, per_img, budget)
    nb = batch_block
    assert n % nb == 0, "batch_block must divide the batch size"

    kernel = functools.partial(expand_mask_kernel, stride=stride, padding=padding,
                               unroll=max(1, min(nb, 8)))
    out_i8 = pl.pallas_call(
        kernel,
        out_shape=jax.ShapeDtypeStruct((n, hs, ws), jnp.int8),
        grid=(n // nb,),
        in_specs=[pl.BlockSpec((nb, c, h, w), lambda b: (b, 0, 0, 0))],
        out_specs=pl.BlockSpec((nb, hs, ws), lambda b: (b, 0, 0)),
        compiler_params=pltpu.CompilerParams(
            dimension_semantics=("parallel",),
            vmem_limit_bytes=int(vmem_limit)),
    )(x)
    # int8 -> bool relabel and C-broadcast are cheap XLA ops that fuse into the
    # consumer; the kernel never writes the C redundant channels.
    return jnp.broadcast_to(out_i8.astype(jnp.bool_)[:, None], (n, c, hs, ws))


def expand_mask_reference(x, stride=2, padding=1):
    """Pure-JAX reference mirroring the PyTorch forward (f32 throughout)."""
    n, c, h, w = x.shape
    xf = x.astype(jnp.float32)
    if stride > 1:
        hs, ws = h * stride, w * stride
        up = jnp.zeros((n, c, hs, ws), jnp.float32)
        up = up.at[:, :, ::stride, ::stride].set(xf)
    else:
        hs, ws = h, w
        up = xf
    k = 1 + 2 * padding
    padded = jnp.pad(up, ((0, 0), (0, 0), (padding, padding), (padding, padding)))
    acc = jnp.zeros((n, hs, ws), jnp.float32)
    for di in range(k):
        for dj in range(k):
            acc = acc + padded[:, :, di:di + hs, dj:dj + ws].sum(axis=1)
    return jnp.broadcast_to((acc > 0.5)[:, None], (n, c, hs, ws))


if __name__ == "__main__":
    stride, padding, mask_channel_group = 2, 1, 4
    N, C, H, W = 2, mask_channel_group, 16, 16   # x channels == mask_channel_group

    key = jax.random.PRNGKey(0)
    # synthetic 0/1 mask input (as produced upstream in dyn_resnet)
    x = (jax.random.uniform(key, (N, C, H, W)) > 0.7).astype(jnp.float32)

    out = expand_mask(x, stride=stride, padding=padding)
    out = jax.block_until_ready(out)

    ref = expand_mask_reference(x, stride=stride, padding=padding)
    assert out.shape == (N, C, H * stride, W * stride)
    assert out.dtype == jnp.bool_
    assert bool(jnp.all(out == ref))

    print("KERNEL_OK")
</pallas_src>

<mosaic_0001>
module attributes {stable_mosaic.version = 11 : i64} {
  func.func @expand_mask_kernel(%arg0: i32, %arg1: memref<1x4x16x16xf32, #tpu.memory_space<vmem>>, %arg2: memref<1x32x32xi8, #tpu.memory_space<vmem>>) attributes {dimension_semantics = [#tpu.dimension_semantics<parallel>], iteration_bounds = array<i64: 2>, scalar_prefetch = 0 : i64, scratch_operands = 0 : i64, tpu.core_type = #tpu.core_type<tc>, window_params = [{transform_indices = @transform_0, window_bounds = array<i64: 1, 4, 16, 16>}, {transform_indices = @transform_1, window_bounds = array<i64: 1, 32, 32>}]} {
    %0 = tpu.iota {dimensions = array<i32: 0>} : vector<32x16xi32>
    %1 = tpu.iota {dimensions = array<i32: 1>} : vector<32x16xi32>
    %c2_i32 = arith.constant 2 : i32
    %2 = vector.broadcast %c2_i32 : i32 to vector<32x16xi32>
    %3 = arith.muli %1, %2 : vector<32x16xi32>
    %4 = arith.subi %0, %3 : vector<32x16xi32>
    %5 = math.absi %4 : vector<32x16xi32>
    %c1_i32 = arith.constant 1 : i32
    %6 = vector.broadcast %c1_i32 : i32 to vector<32x16xi32>
    %7 = arith.cmpi sle, %5, %6 : vector<32x16xi32>
    %cst = arith.constant 1.000000e+00 : f32
    %cst_0 = arith.constant 0.000000e+00 : f32
    %8 = vector.broadcast %cst : f32 to vector<32x16xf32>
    %9 = vector.broadcast %cst_0 : f32 to vector<32x16xf32>
    %10 = arith.select %7, %8, %9 : vector<32x16xi1>, vector<32x16xf32>
    %11 = arith.truncf %10 : vector<32x16xf32> to vector<32x16xbf16>
    %12 = tpu.iota {dimensions = array<i32: 0>} : vector<16x32xi32>
    %13 = tpu.iota {dimensions = array<i32: 1>} : vector<16x32xi32>
    %c2_i32_1 = arith.constant 2 : i32
    %14 = vector.broadcast %c2_i32_1 : i32 to vector<16x32xi32>
    %15 = arith.muli %12, %14 : vector<16x32xi32>
    %16 = arith.subi %13, %15 : vector<16x32xi32>
    %17 = math.absi %16 : vector<16x32xi32>
    %c1_i32_2 = arith.constant 1 : i32
    %18 = vector.broadcast %c1_i32_2 : i32 to vector<16x32xi32>
    %19 = arith.cmpi sle, %17, %18 : vector<16x32xi32>
    %cst_3 = arith.constant 1.000000e+00 : f32
    %cst_4 = arith.constant 0.000000e+00 : f32
    %20 = vector.broadcast %cst_3 : f32 to vector<16x32xf32>
    %21 = vector.broadcast %cst_4 : f32 to vector<16x32xf32>
    %22 = arith.select %19, %20, %21 : vector<16x32xi1>, vector<16x32xf32>
    %23 = arith.truncf %22 : vector<16x32xf32> to vector<16x32xbf16>
    %c0_i32 = arith.constant 0 : i32
    %24 = arith.index_cast %c0_i32 : i32 to index
    %c0 = arith.constant 0 : index
    %c0_5 = arith.constant 0 : index
    %c0_6 = arith.constant 0 : index
    %25 = vector.load %arg1[%24, %c0, %c0_5, %c0_6] : memref<1x4x16x16xf32, #tpu.memory_space<vmem>>, vector<1x4x16x16xf32>
    %26 = vector.shape_cast %25 : vector<1x4x16x16xf32> to vector<4x16x16xf32>
    %cst_7 = arith.constant dense<0.000000e+00> : vector<16x16xf32>
    %27 = vector.multi_reduction <add>, %26, %cst_7 [0] : vector<4x16x16xf32> to vector<16x16xf32>
    %28 = arith.truncf %27 : vector<16x16xf32> to vector<16x16xbf16>
    %cst_8 = arith.constant dense<0.000000e+00> : vector<32x16xf32>
    %29 = tpu.matmul %11, %28, %cst_8 {dimension_numbers = #tpu.dot_dimension_numbers<[1], [0], [0], [1], [0, 0, 1, 1], [], []>} : vector<32x16xbf16>, vector<16x16xbf16>, vector<32x16xf32> -> vector<32x16xf32>
    %30 = arith.truncf %29 : vector<32x16xf32> to vector<32x16xbf16>
    %cst_9 = arith.constant dense<0.000000e+00> : vector<32x32xf32>
    %31 = tpu.matmul %30, %23, %cst_9 {dimension_numbers = #tpu.dot_dimension_numbers<[1], [0], [0], [1], [0, 0, 1, 1], [], []>} : vector<32x16xbf16>, vector<16x32xbf16>, vector<32x32xf32> -> vector<32x32xf32>
    %cst_10 = arith.constant 5.000000e-01 : f32
    %32 = vector.broadcast %cst_10 : f32 to vector<32x32xf32>
    %33 = arith.cmpf ogt, %31, %32 : vector<32x32xf32>
    %34 = arith.extui %33 : vector<32x32xi1> to vector<32x32xi8>
    %35 = arith.index_cast %c0_i32 : i32 to index
    %c0_11 = arith.constant 0 : index
    %c0_12 = arith.constant 0 : index
    %36 = vector.load %arg2[%35, %c0_11, %c0_12] : memref<1x32x32xi8, #tpu.memory_space<vmem>>, vector<1x32x32xi8>
    %37 = vector.shape_cast %36 : vector<1x32x32xi8> to vector<32x32xi8>
    %38 = vector.shape_cast %34 : vector<32x32xi8> to vector<1x32x32xi8>
    tpu.vector_store %arg2[%35, %c0_11, %c0_12], %38 {strides = array<i32>} : memref<1x32x32xi8, #tpu.memory_space<vmem>>, vector<1x32x32xi8>,
    %c1_i32_13 = arith.constant 1 : i32
    return
  }
  func.func @transform_0(%arg0: i32) -> (i32, i32, i32, i32) {
    %c0_i32 = arith.constant 0 : i32
    %c0_i32_0 = arith.constant 0 : i32
    %c0_i32_1 = arith.constant 0 : i32
    %c0_i32_2 = arith.constant 0 : i32
    return %arg0, %c0_i32, %c0_i32_0, %c0_i32_1 : i32, i32, i32, i32
  }
  func.func @transform_1(%arg0: i32) -> (i32, i32, i32) {
    %c0_i32 = arith.constant 0 : i32
    %c0_i32_0 = arith.constant 0 : i32
    %c0_i32_1 = arith.constant 0 : i32
    return %arg0, %c0_i32, %c0_i32_0 : i32, i32, i32
  }
}

</mosaic_0001>

<bundles_post_ra>
// kernel: tpu_custom_call.1
= control target key start
LH: loop header
LB: loop body
LE: loop exit
PB: predicated region body
PF: predicated region fallthrough
CT: control target
= control target key end

     0   :  { %6 = vsyncpa [#allocation3], 0  ;;  %s706_s0 = inlined_call_operand.hbm [shape: f32[2,4,16,16], index: 0, kind: input, shape index: {}]   ;;  %s707_s1 = inlined_call_operand.hbm [shape: s8[2,32,32], index: 1, kind: output, shape index: {}]  }
   0x1   :  { %8 = vsyncpa [#allocation3 + $0x1], 0 }
   0x2   :  { %9 = vsyncpa [#allocation4], 0 }
   0x3   :  { %11 = vsyncpa [#allocation4 + $0x1], 0  ;;  %s550_s6 = smov 0   ;;  %s552_s7 = smov 0  }
   0x4   :  { %s554_s8 = smov 0   ;;  %s556_s9 = smov 0  }
   0x5 LB: > { %s571_s10 = sadd.s32 4294967295, %s533_s9   ;;  %s364_s11 = sadd.s32 4294967294, %s533_s9   ;;  %s533_s9 = sphi %s556_s9, %s717_s9   ;;  %s529_s8 = sphi %s554_s8, %s716_s8   ;;  %s525_s7 = sphi %s552_s7, %s715_s7   ;;  %s521_s6 = sphi %s550_s6, %s714_s6  }
   0x6   : > { %s575_s12 = sadd.s32 1, %s533_s9   ;;  %s24_s13 = sadd.s32 1, %s529_s8 }
   0x7   : > { %s21_s14 = ssub.s32 %s533_s9, %s575_s12  ;;  %p31_p0 = scmp.ne.s32.totalorder %s529_s8, %s525_s7 }
   0x8   : > { %p22_p1 = scmp.eq.s32.totalorder %s21_s14, 0  ;;  %p32_p2 = scmp.eq.s32.totalorder %s533_s9, 0 }
   0x9   : > { %p37_p3 = scmp.ne.s32.totalorder %s525_s7, %s521_s6  ;;  %p38_p4 = scmp.eq.s32.totalorder %s571_s10, 0 }
   0xa   : > { %s587_s15 = scalar_select %p22_p1, %s529_s8, %s24_s13  }
   0xb   : > { %p589_p5 = por %p32_p2, %p31_p0  ;;  %p593_p6 = por %p38_p4, %p37_p3 }
   0xc   : > { %p61_p7 = scmp.eq.s32.totalorder %s571_s10, 1  ;;  %p67_p8 = scmp.eq.s32.totalorder %s364_s11, 1 }
   0xd   : > { %p398_p10 = scmp.lt.s32.totalorder %s533_s9, 2  ;;  %s87_s20 = sand.u32 1, %s529_s8  }
   0xe   : > { %p600_p11 = por %p61_p7, %p31_p0  ;;  %p604_p12 = por %p67_p8, %p37_p3 }
   0xf   : > { %s383_s21 = sshll.u32 %s533_s9, 6  ;;  %s367_s22 = sshll.u32 %s87_s20, 6 }
  0x10   : > { %s96_s25 = scalar_lea.hbm %s706_s0, %s383_s21  ;;  %s91_s27 = scalar_lea.vmem [#allocation2], %s367_s22 }
  0x11   : > { %s97_s26 = sshll.u32 %s96_s25, 4  ;;  %s99_s28 = sshll.u32 %s91_s27, 4  ;;  %s98_s26 = int_to_ptr.hbm [resolvable:$true] %s97_s26  ;;  %s100_s28 = int_to_ptr.vmem [resolvable:$true] %s99_s28 }
  0x12   : > { %p615_p13 = pnand %p398_p10, %p589_p5  ;;  %p370_p0 = scmp.ge.s32.totalorder %s533_s9, 1 }
  0x13   : > { %p107_p1 = scmp.lt.s32.totalorder %s533_s9, 3  ;;  %s88_s30 = scalar_lea.sflag [#allocation3], %s87_s20 }
  0x14   : > { %s437_s2 = sshra.s32 %s98_s26, 4  ;;  %p441_p3 = pneg %p615_p13  ;;  %s438_s2 = int_to_ptr.hbm [resolvable:$true] %s437_s2 }
  0x15   : > { %s439_s3 = scalar_lea.hbm %s438_s2, 64  ;;  %s444_s11 = scalar_lea.hbm %s706_s0, 128 }
  0x16   : > { %p440_p2 = scmp.ne.s32.totalorder %s438_s2, %s439_s3  ;;  %p445_p5 = scmp.lt.s32.totalorder %s438_s2, %s706_s0 }
  0x17   : > { %p446_p8 = scmp.lt.s32.totalorder %s444_s11, %s439_s3 }
  0x18   : > { %p442_p4 = pnand %p441_p3, %p440_p2 }
  0x19   : > { %p447_p10 = por %p446_p8, %p445_p5 }
  0x1a   : > { %p443_p7 = pneg %p442_p4 }
  0x1c   : > { %p448_p9 = pnand %p447_p10, %p443_p7 }
  0x1e   : > { %451 = shalt.err (!%p448_p9)
}
  0x1f   : > { %s535_s16 = smov 128   ;;  %s536_s20 = smov 8  }
  0x20   : > { %393 = dma.hbm_to_vmem [thread:$0]  (!%p615_p13), %s98_s26, 1024, %s100_s28, %s88_s30, %s535_s16, %s535_s16, %s536_s20  }
  0x21   : > { %p108_p2 = pnand %p370_p0, %p107_p1 }
  0x22   : > { %s636_s21 = sand.u32 (!%p108_p2), 1, %s525_s7  }
  0x23   : > { %111 = sbr.rel (%p108_p2) target bundleno = 350 (0x15e), region = 24  ;;  %s371_s22 = sshll.u32 (!%p108_p2), %s636_s21, 6 }
  0x24   : > { %s114_s23 = scalar_lea.sflag (!%p108_p2), [#allocation3], %s636_s21  ;;  %s117_s24 = scalar_lea.vmem (!%p108_p2), [#allocation2], %s371_s22 }
  0x28   : > { %512 = dma.done.wait (%p593_p6), %s114_s23, 1024  }
  0x29   : > { %514 = vsyncadd (%p593_p6), %s114_s23, 4294966272  ;;  %v140_v0 = vlaneseq  ;;  %vm197_vm0 = vcmask 130048   ;;  %v189_v8 = vld [vmem:[%s117_s24] sm:$0xff]  ;;  %v190_v9 = vld [vmem:[%s117_s24 + $0x8] sm:$0xff]  ;;  %v537_v40 = vmov 0.0   ;;  %s372_s17 = sshll.u32 %s636_s21, 3 }
  0x2a   : > { %v191_v10 = vld [vmem:[%s117_s24 + $0x10] sm:$0xff]  ;;  %v192_v13 = vld [vmem:[%s117_s24 + $0x18] sm:$0xff]  ;;  %v193_v14 = vld [vmem:[%s117_s24 + $0x20] sm:$0xff]  ;;  %v198_v16 = vsel %vm197_vm0, %v189_v8, 0.0  ;;  %v205_v18 = vsel %vm197_vm0, %v190_v9, 0.0  ;;  %s380_s25 = sshll.u32 %s571_s10, 3 }
  0x2b   : > { %v644_v1 = vshrl.u32 %v140_v0, 7  ;;  %v646_v2 = vand.u32 127, %v140_v0  ;;  %v194_v15 = vld [vmem:[%s117_s24 + $0x28] sm:$0xff]  ;;  %v199_v17 = vsel %vm197_vm0, %v191_v10, 0.0  ;;  %v195_v20 = vld [vmem:[%s117_s24 + $0x30] sm:$0xff]  ;;  %v196_v21 = vld [vmem:[%s117_s24 + $0x38] sm:$0xff]  ;;  %s289_s28 = scalar_lea.hbm %s707_s1, %s380_s25 }
  0x2c   : > { %v200_v22 = vadd.f32 %v199_v17, %v198_v16  ;;  %v201_v23 = vsel %vm197_vm0, %v193_v14, 0.0  ;;  %v206_v24 = vsel %vm197_vm0, %v192_v13, 0.0  ;;  %v208_v25 = vsel %vm197_vm0, %v194_v15, 0.0  ;;  %s136_s29 = scalar_lea.vmem [#allocation5], %s372_s17  ;;  %s293_s2 = sshll.u32 %s289_s28, 4  ;;  %s294_s2 = int_to_ptr.hbm [resolvable:$true] %s293_s2 }
  0x2d   : > { %v649_v3 = vadd.s32 8, %v644_v1  ;;  %v147_v4 = vmul.u32 2, %v646_v2  ;;  %v143_v5 = vadd.s32 16, %v644_v1  ;;  %v144_v6 = vadd.s32 24, %v644_v1  ;;  %s291_s30 = sshll.u32 %s136_s29, 4  ;;  %s279_s10 = scalar_lea.sflag [#allocation4], %s636_s21  ;;  %s292_s30 = int_to_ptr.vmem [resolvable:$true] %s291_s30 }
  0x2e   : > { %v203_v26 = vsel %vm197_vm0, %v195_v20, 0.0  ;;  %v207_v27 = vadd.f32 %v206_v24, %v205_v18  ;;  %v210_v28 = vsel %vm197_vm0, %v196_v21, 0.0  ;;  %v202_v29 = vadd.f32 %v201_v23, %v200_v22  ;;  %s481_s3 = sshra.s32 %s294_s2, 4  ;;  %s487_s13 = scalar_lea.hbm %s707_s1, 16  ;;  %s482_s3 = int_to_ptr.hbm [resolvable:$true] %s481_s3 }
  0x2f   : > { %v148_v7 = vsub.s32 %v644_v1, %v147_v4  ;;  %v149_v11 = vsub.s32 %v649_v3, %v147_v4  ;;  %v150_v12 = vsub.s32 %v143_v5, %v147_v4  ;;  %v151_v19 = vsub.s32 %v144_v6, %v147_v4  ;;  %s483_s4 = scalar_lea.hbm %s482_s3, 8  ;;  %p488_p0 = scmp.lt.s32.totalorder %s482_s3, %s707_s1 }
  0x30   : > { %v209_v32 = vadd.f32 %v208_v25, %v207_v27  ;;  %v204_v34 = vadd.f32 %v203_v26, %v202_v29  ;;  %v174_v49 = vmul.u32 2, %v644_v1  ;;  %v175_v50 = vmul.u32 2, %v649_v3  ;;  %p484_p6 = scmp.ne.s32.totalorder %s482_s3, %s483_s4  ;;  %p489_p1 = scmp.lt.s32.totalorder %s487_s13, %s483_s4 }
  0x31   : > { %vm152_vm1 = vcmp.lt.s32.totalorder %v148_v7, 0  ;;  %v153_v30 = vsub.s32 0, %v148_v7  ;;  %vm155_vm2 = vcmp.lt.s32.totalorder %v149_v11, 0  ;;  %v156_v31 = vsub.s32 0, %v149_v11 }
  0x32   : > { %vm158_vm3 = vcmp.lt.s32.totalorder %v150_v12, 0  ;;  %v159_v33 = vsub.s32 0, %v150_v12  ;;  %vm161_vm4 = vcmp.lt.s32.totalorder %v151_v19, 0  ;;  %v162_v37 = vsub.s32 0, %v151_v19  ;;  %p485_p9 = pnand %p484_p6, %p600_p11  ;;  %p490_p3 = por %p489_p1, %p488_p0 }
  0x33   : > { %v154_v35 = vsel %vm152_vm1, %v153_v30, %v148_v7  ;;  %v157_v36 = vsel %vm155_vm2, %v156_v31, %v149_v11  ;;  %v211_v38 = vadd.f32 %v210_v28, %v209_v32  ;;  %v176_v51 = vsub.s32 %v646_v2, %v174_v49 }
  0x34   : > { %vm164_vm5 = vcmp.le.s32.totalorder %v154_v35, 1  ;;  %vm165_vm6 = vcmp.le.s32.totalorder %v157_v36, 1  ;;  %v160_v39 = vsel %vm158_vm3, %v159_v33, %v150_v12  ;;  %v163_v43 = vsel %vm161_vm4, %v162_v37, %v151_v19  ;;  %p486_p13 = pneg %p485_p9 }
  0x35   : > { %v168_v41 = vsel %vm164_vm5, 1.0, %v537_v40  ;;  %v169_v42 = vsel %vm165_vm6, 1.0, %v537_v40  ;;  %vm166_vm7 = vcmp.le.s32.totalorder %v160_v39, 1  ;;  %v212_v44 = vpack.c.bf16 %v211_v38, %v204_v34 }
  0x36   : > { %vm167_vm8 = vcmp.le.s32.totalorder %v163_v43, 1  ;;  %v170_v45 = vsel %vm166_vm7, 1.0, %v537_v40  ;;  %v172_v46 = vpack.c.bf16 %v169_v42, %v168_v41  ;;  %v177_v52 = vsub.s32 %v646_v2, %v175_v50  ;;  %p491_p4 = pnand %p490_p3, %p486_p13 }
  0x37   : > { %v171_v47 = vsel %vm167_vm8, 1.0, %v537_v40  ;;  %226 = vmatpush.bf16.msra.mxu0 %v212_v44  ;;  %384 = vmatpush.bf16.msra.mxu2 %v212_v44  ;;  %v179_v53 = vsub.s32 0, %v176_v51  ;;  %vm178_vm9 = vcmp.lt.s32.totalorder %v176_v51, 0  ;;  %v538_v57 = vmov 1.0|1.0  }
  0x38   : > { %v173_v48 = vpack.c.bf16 %v171_v47, %v170_v45  ;;  %v182_v54 = vsub.s32 0, %v177_v52  ;;  %vm181_vm10 = vcmp.lt.s32.totalorder %v177_v52, 0  ;;  %v539_v4 = vmov 0  }
  0x39   : > { %v180_v55 = vsel %vm178_vm9, %v179_v53, %v176_v51 }
  0x3a   : > { %373 = vmatmul.msk.bf16.vlgmr.msra.gmra.mxu0 %vm197_vm0, %v172_v46  ;;  %374 = vmatmul.msk.bf16.vlgmr.msra.gmra.mxu2 %vm197_vm0, %v173_v48  ;;  %v183_v56 = vsel %vm181_vm10, %v182_v54, %v177_v52  ;;  %vm184_vm11 = vcmp.le.s32.totalorder %v180_v55, 1 }
  0x3b   : > { %vm185_vm12 = vcmp.le.s32.totalorder %v183_v56, 1 }
  0x3c   : > { %vm375_vm13 = vmpackc.low %vm185_vm12, %vm184_vm11 }
  0x3d   : > { %376 = vmatpush.bf16.msk.msra.mxu1 %vm375_vm13, %v538_v57  ;;  %385 = vmatpush.bf16.msk.msra.mxu3 %vm375_vm13, %v538_v57 }
  0xb7   : > { %v228_v58 = vpop.f32.mrf.mxu0 }
  0xbd   : > { %v233_v59 = vpop.f32.mrf.mxu2 }
  0xbf   : > { %v230_v60 = vpop.f32.mrf.mxu0 }
  0xc0   : > { %v238_v61 = vpack.c.bf16 %v230_v60, %v228_v58 }
  0xc2   : > { %377 = vmatmul.msk.bf16.vlgmr.msra.gmra.mxu1 %vm197_vm0, %v238_v61 }
  0xc5   : > { %v235_v62 = vpop.f32.mrf.mxu2 }
  0xc6   : > { %v239_v63 = vpack.c.bf16 %v235_v62, %v233_v59 }
  0xc8   : > { %378 = vmatmul.msk.bf16.vlgmr.msra.gmra.mxu3 %vm197_vm0, %v239_v63  ;;  %vm276_vm0 = vcmask 261120  }
 0x13f   : > { %v255_v0 = vpop.f32.mrf.mxu1 }
 0x140   : > { %vm265_vm15 = vcmp.gt.f32.partialorder %v255_v0, 0.5 }
 0x147   : > { %v257_v2 = vpop.f32.mrf.mxu1 }
 0x148   : > { %vm266_vm14 = vcmp.gt.f32.partialorder %v257_v2, 0.5 }
 0x149   : > { %vm269_vm1 = vmpackc.low %vm266_vm14, %vm265_vm15 }
 0x14a   : > { %v271_v5 = vsel %vm269_vm1, 16711935, %v539_v4 }
 0x14b   : > { %v260_v1 = vpop.f32.mrf.mxu3 }
 0x14c   : > { %vm267_vm2 = vcmp.gt.f32.partialorder %v260_v1, 0.5 }
 0x153   : > { %v262_v3 = vpop.f32.mrf.mxu3 }
 0x154   : > { %vm268_vm3 = vcmp.gt.f32.partialorder %v262_v3, 0.5 }
 0x155   : > { %vm270_vm4 = vmpackc.low %vm268_vm3, %vm267_vm2 }
 0x156   : > { %v272_v6 = vsel %vm270_vm4, 16711935, %v539_v4 }
 0x157   : > { %v273_v7 = vpack.c.b8 %v272_v6, %v271_v5 }
 0x159   : > { %vm274_vm5 = vnez %v273_v7 }
 0x15a   : > { %v275_v8 = vsel %vm274_vm5, 16843009, %v539_v4 }
 0x15b   : > { %277 = vst.msk [vmem:[%s136_s29] sm:$0xff] %vm276_vm0, %v275_v8 }
 0x15c   : > { %494 = shalt.err (!%p491_p4)
}
 0x15d   : > { %388 = dma.vmem_to_hbm [thread:$0]  (%p600_p11), %s292_s30, 128, %s294_s2, %s279_s10  }
 0x15e PF: > { %s305_s20 = sand.u32 1, %s521_s6   ;;  %p713_p7 = scmp.ge.s32.totalorder %s533_s9, 2 }
 0x15f   : > { %s306_s21 = scalar_lea.sflag [#allocation4], %s305_s20 }
 0x160   : > { %p395_p5 = pnand %p713_p7, %p604_p12 }
 0x162   : > { %p396_p8 = pneg %p395_p5 }
 0x164   : > { %516 = dma.done.wait (%p396_p8), %s306_s21, 128  }
 0x165   : > { %518 = vsyncadd (%p396_p8), %s306_s21, 4294967168  ;;  %p14_p10 = scmp.ge.s32.totalorder %s575_s12, 4   ;;  %s714_s6 = smov %s525_s7 }
 0x166   : > { %s715_s7 = smov %s529_s8  ;;  %s716_s8 = smov %s587_s15 }
 0x167   : > { %s717_s9 = smov %s575_s12  ;;  %16 = sbr.rel (!%p14_p10) target bundleno = 5 (0x5), region = 69 }
 0x16c   :  { %312 = vsyncpa [#allocation3], 1 }
 0x16d   :  { %314 = vsyncpa [#allocation3 + $0x1], 1 }
 0x16e   :  { %315 = vsyncpa [#allocation4], 1 }
 0x16f   :  { %317 = vsyncpa [#allocation4 + $0x1], 1 }

</bundles_post_ra>
